<compile_context>
chip_gen: v5e
topology: v5e:2x2
jax: 0.10.0
libtpu: 0.0.40
codegen_flags: <defaults>
</compile_context>

<pallas_src>
import functools

import jax
import jax.numpy as jnp
from jax import lax
from jax.experimental import pallas as pl
from jax.experimental.pallas import tpu as pltpu


def _linear_kernel(x_ref, w_ref, b_ref, o_ref):
    # x_ref: (TB, K) f32 ; w_ref: (N, K) f32 (PyTorch nn.Linear layout, NOT transposed)
    # b_ref: (1, N)  f32 ; o_ref: (TB, N) f32
    acc = lax.dot_general(
        x_ref[...], w_ref[...],
        dimension_numbers=(((1,), (1,)), ((), ())),   # contract K against K
        preferred_element_type=jnp.float32,
    )
    o_ref[...] = (acc + b_ref[...]).astype(o_ref.dtype)
    # TODO(synk): a lane-dense repack of the (TB, 16) tile to (TB//8, 128) before
    # the store would turn masked vst.msk writes into full-lane stores; output is
    # only ~6% of HBM traffic here, so skipped for simplicity.


# Whole-problem VMEM footprint (bytes) below which we skip the grid entirely.
_GRIDLESS_VMEM_BUDGET = 8 * 1024 * 1024
# Per-buffer target for the streamed X tile on the gridded path (double-buffered
# by the pipeline -> ~2x this in VMEM for X).
_X_TILE_VMEM_BUDGET = 8 * 1024 * 1024
# Scoped-VMEM limit for the gridded path: fits every generation's physical VMEM
# (v5e/v6e 128 MiB, v7x 64 MiB) and covers the ~17 MiB double-buffered footprint.
_VMEM_LIMIT_BYTES = 32 * 1024 * 1024


def _pick_tile_b(in_features: int) -> int:
    """Rows per grid step: ~8 MiB of X per buffer, clamped, multiple of 8."""
    tile = _X_TILE_VMEM_BUDGET // (in_features * 4)
    tile = max(256, min(int(tile), 8192))
    return (tile // 8) * 8


@functools.partial(jax.jit, static_argnames=("input_size", "seq_len"))
def softmax_regression_forward(X, weight, bias2d, *, input_size, seq_len):
    """X: (B, seq_len, input_size) f32; weight: (n_outputs, in_features) f32
    (PyTorch layout); bias2d: (1, n_outputs) f32 (reshaped once at init)."""
    in_features = input_size * seq_len
    # Matches torch's contiguous .view — metadata-only for a contiguous array.
    flat = X.reshape(-1, in_features)
    B = flat.shape[0]
    n_outputs = weight.shape[0]
    out_shape = jax.ShapeDtypeStruct((B, n_outputs), jnp.float32)

    cost = pl.CostEstimate(
        flops=2 * B * in_features * n_outputs,
        transcendentals=0,
        bytes_accessed=4 * (B * in_features + n_outputs * in_features
                            + B * n_outputs + n_outputs),
    )

    total_bytes = 4 * (B * in_features + B * n_outputs
                       + n_outputs * in_features + n_outputs)

    if total_bytes <= _GRIDLESS_VMEM_BUDGET:
        # Small/moderate batch: one kernel invocation, no grid, no pipeline
        # machinery, full arrays resident in VMEM (one DMA in, one DMA out).
        return pl.pallas_call(
            _linear_kernel,
            out_shape=out_shape,
            in_specs=[
                pl.BlockSpec(memory_space=pltpu.MemorySpace.VMEM),
                pl.BlockSpec(memory_space=pltpu.MemorySpace.VMEM),
                pl.BlockSpec(memory_space=pltpu.MemorySpace.VMEM),
            ],
            out_specs=pl.BlockSpec(memory_space=pltpu.MemorySpace.VMEM),
            cost_estimate=cost,
        )(flat, weight, bias2d)

    # Large batch: stream X/out tiles with big VMEM-budgeted blocks.  Weight and
    # bias blocks return constant indices so they are DMA'd once and stay VMEM
    # resident; grid = cdiv handles a ragged last tile (OOB writes are dropped).
    tile_b = _pick_tile_b(in_features)
    return pl.pallas_call(
        _linear_kernel,
        out_shape=out_shape,
        grid=(pl.cdiv(B, tile_b),),
        in_specs=[
            pl.BlockSpec((tile_b, in_features), lambda i: (i, 0)),
            pl.BlockSpec((n_outputs, in_features), lambda i: (0, 0)),
            pl.BlockSpec((1, n_outputs), lambda i: (0, 0)),
        ],
        out_specs=pl.BlockSpec((tile_b, n_outputs), lambda i: (i, 0)),
        compiler_params=pltpu.CompilerParams(
            dimension_semantics=("parallel",),
            vmem_limit_bytes=_VMEM_LIMIT_BYTES,
        ),
        cost_estimate=cost,
    )(flat, weight, bias2d)


if __name__ == "__main__":
    # Module hyperparameters (small, consistent with the PyTorch forward).
    batch_size = 2
    seq_len = 8
    input_size = 32
    n_outputs = 16
    in_features = input_size * seq_len

    key = jax.random.PRNGKey(0)
    kx, kw, kb, kx2, kx3 = jax.random.split(key, 5)

    # Deterministic synthetic parameters (shapes from nn.Linear(in_features, n_outputs)).
    bound = 1.0 / float(jnp.sqrt(in_features))
    weight = jax.random.uniform(kw, (n_outputs, in_features),
                                minval=-bound, maxval=bound, dtype=jnp.float32)
    bias = jax.random.uniform(kb, (n_outputs,),
                              minval=-bound, maxval=bound, dtype=jnp.float32)
    bias2d = bias.reshape(1, n_outputs)   # one-time init-side reshape (not per call)

    # --- Shipped tiny shape -> gridless single-block path -------------------
    X = jax.random.normal(kx, (batch_size, seq_len, input_size), dtype=jnp.float32)
    out = jax.block_until_ready(
        softmax_regression_forward(X, weight, bias2d,
                                   input_size=input_size, seq_len=seq_len))
    ref = X.reshape(-1, in_features) @ weight.T + bias
    assert out.shape == (batch_size, n_outputs)
    assert jnp.allclose(out, ref, atol=1e-4, rtol=1e-4)

    # --- Moderate batch (B=512) -> now also gridless (fits VMEM budget) -----
    Xm = jax.random.normal(kx2, (512, seq_len, input_size), dtype=jnp.float32)
    outm = jax.block_until_ready(
        softmax_regression_forward(Xm, weight, bias2d,
                                   input_size=input_size, seq_len=seq_len))
    refm = Xm.reshape(-1, in_features) @ weight.T + bias
    assert outm.shape == (512, n_outputs)
    assert jnp.allclose(outm, refm, atol=1e-4, rtol=1e-4)

    # --- Large ragged batch -> gridded path, big tiles, partial last tile ----
    B_large = 16421   # > budget, not a multiple of the tile -> grid=3, ragged tail
    Xl = jax.random.normal(kx3, (B_large, seq_len, input_size), dtype=jnp.float32)
    outl = jax.block_until_ready(
        softmax_regression_forward(Xl, weight, bias2d,
                                   input_size=input_size, seq_len=seq_len))
    refl = Xl.reshape(-1, in_features) @ weight.T + bias
    assert outl.shape == (B_large, n_outputs)
    assert jnp.allclose(outl, refl, atol=1e-4, rtol=1e-4)

    print("KERNEL_OK")
</pallas_src>

<mosaic_0001>
module attributes {stable_mosaic.version = 11 : i64} {
  func.func @_linear_kernel(%arg0: memref<2x256xf32, #tpu.memory_space<vmem>>, %arg1: memref<16x256xf32, #tpu.memory_space<vmem>>, %arg2: memref<1x16xf32, #tpu.memory_space<vmem>>, %arg3: memref<2x16xf32, #tpu.memory_space<vmem>>) attributes {dimension_semantics = [], scalar_prefetch = 0 : i64, scratch_operands = 0 : i64, tpu.core_type = #tpu.core_type<tc>} {
    %c0 = arith.constant 0 : index
    %c0_0 = arith.constant 0 : index
    %0 = vector.load %arg0[%c0, %c0_0] : memref<2x256xf32, #tpu.memory_space<vmem>>, vector<2x256xf32>
    %c0_1 = arith.constant 0 : index
    %c0_2 = arith.constant 0 : index
    %1 = vector.load %arg1[%c0_1, %c0_2] : memref<16x256xf32, #tpu.memory_space<vmem>>, vector<16x256xf32>
    %cst = arith.constant dense<0.000000e+00> : vector<2x16xf32>
    %2 = tpu.matmul %0, %1, %cst {dimension_numbers = #tpu.dot_dimension_numbers<[1], [1], [0], [0], [0, 0, 1, 0], [], []>} : vector<2x256xf32>, vector<16x256xf32>, vector<2x16xf32> -> vector<2x16xf32>
    %c0_3 = arith.constant 0 : index
    %c0_4 = arith.constant 0 : index
    %3 = vector.load %arg2[%c0_3, %c0_4] : memref<1x16xf32, #tpu.memory_space<vmem>>, vector<1x16xf32>
    %4 = vector.broadcast %3 : vector<1x16xf32> to vector<2x16xf32>
    %5 = arith.addf %2, %4 : vector<2x16xf32>
    %c0_5 = arith.constant 0 : index
    %c0_6 = arith.constant 0 : index
    %6 = vector.load %arg3[%c0_5, %c0_6] : memref<2x16xf32, #tpu.memory_space<vmem>>, vector<2x16xf32>
    tpu.vector_store %arg3[%c0_5, %c0_6], %5 {strides = array<i32>} : memref<2x16xf32, #tpu.memory_space<vmem>>, vector<2x16xf32>,
    return
  }
}

</mosaic_0001>

<bundles_post_ra>
// kernel: softmax_regression_forward.1
= control target key start
LH: loop header
LB: loop body
LE: loop exit
PB: predicated region body
PF: predicated region fallthrough
CT: control target
= control target key end

     0   :  { %8 = vsyncpa [#allocation3], 0  ;;  %s198_s0 = inlined_call_operand.vmem [shape: f32[2,256], index: 0, kind: input, shape index: {}]   ;;  %s199_s1 = inlined_call_operand.hbm [shape: f32[16,256], index: 1, kind: input, shape index: {}]   ;;  %s200_s2 = inlined_call_operand.vmem [shape: f32[1,16], index: 2, kind: input, shape index: {}]   ;;  %s201_s3 = inlined_call_operand.hbm [shape: f32[2,16], index: 3, kind: output, shape index: {}]  }
   0x1   :  { %9 = vsyncpa [#allocation4], 0  ;;  %s16_s14 = sshll.u32 %s199_s1, 4  ;;  %s162_s15 = smov [#allocation2]   ;;  %s17_s14 = int_to_ptr.hbm [resolvable:$true] %s16_s14 }
   0x2   :  { %s18_s16 = sshll.u32 %s162_s15, 4  ;;  %s163_s17 = smov 256   ;;  %s19_s16 = int_to_ptr.vmem [resolvable:$true] %s18_s16 }
   0x3   :  { %s164_s18 = smov 16  }
   0x4   :  { %24 = dma.hbm_to_vmem [thread:$0]  %s17_s14, 512, %s19_s16, [#allocation3], %s163_s17, %s163_s17, %s164_s18  }
   0x5   :  { %158 = dma.done.wait [#allocation3], 512  }
   0x6   :  { %159 = vsyncadd [#allocation3], 4294966784  ;;  %v31_v0 = vld [vmem:[%s198_s0] sm:$0xf]  ;;  %v34_v1 = vld [vmem:[#allocation2 + $0x10] sm:$0xff]  ;;  %s165_s0 = smov [#allocation5]  }
   0x7   :  { %v35_v2 = vld [vmem:[#allocation2 + $0x18] sm:$0xff]  ;;  %41 = vst [vmem:[#allocation1] ss:$4 sm:$0xff] %v31_v0  ;;  %60 = vmatpush.xpose.msra.mxu0 %v34_v1  ;;  %v32_v3 = vld [vmem:[#allocation2] sm:$0xff]  ;;  %v33_v4 = vld [vmem:[#allocation2 + $0x8] sm:$0xff]  ;;  %s93_s22 = sshll.u32 %s165_s0, 4  ;;  %s94_s22 = int_to_ptr.vmem [resolvable:$true] %s93_s22 }
   0x8   :  { %80 = vmatpush.xpose.msra.mxu1 %v35_v2  ;;  %v109_v7 = vld [vmem:[%s200_s2] ss:$0 sm:$0xff]  ;;  %s95_s25 = sshll.u32 %s201_s3, 4  ;;  %vm86_vm0 = vcmask 123904   ;;  %s96_s25 = int_to_ptr.hbm [resolvable:$true] %s95_s25 }
   0xb   :  { %61 = vmatpush.xpose.msra.mxu0 %v32_v3 }
   0xc   :  { %81 = vmatpush.xpose.msra.mxu1 %v33_v4 }
   0xe   :  { %v42_v5 = vld.sshfl [vmem:[#allocation1] sm:$0xff pattern:$0x73625140]  ;;  %v43_v6 = vld.sshfl [vmem:[#allocation1 + $0x8] sm:$0xff pattern:$0x73625140] }
   0xf   :  { %62 = vmatmul.f32.vlgmr.msra.gmra.mxu0 %v42_v5  ;;  %82 = vmatmul.f32.vlgmr.msra.gmra.mxu1 %v43_v6 }
  0x8c   :  { %v63_v8 = vpop.f32.mrf.mxu0  ;;  %v83_v9 = vpop.f32.mrf.mxu1 }
  0x8d   :  { %v64_v10 = vadd.f32 %v109_v7, %v63_v8 }
  0x8f   :  { %v84_v11 = vadd.f32 %v83_v9, %v64_v10 }
  0x91   :  { %87 = vst.msk [vmem:[#allocation5] sm:$0x3] %vm86_vm0, %v84_v11 }
  0x92   :  { %98 = dma.vmem_to_hbm [thread:$0]  %s94_s22, 32, %s96_s25, [#allocation4]  }
  0x93   :  { %160 = dma.done.wait [#allocation4], 32  }
  0x94   :  { %161 = vsyncadd [#allocation4], 4294967264 }
  0x95   :  { %103 = vsyncpa [#allocation3], 1 }
  0x96   :  { %104 = vsyncpa [#allocation4], 1 }

</bundles_post_ra>
